<compile_context>
chip_gen: v5e
topology: v5e:2x2
jax: 0.10.0
libtpu: 0.0.40
codegen_flags: <defaults>
</compile_context>

<pallas_src>
import functools

import jax
import jax.numpy as jnp
from jax.experimental import pallas as pl
from jax.experimental.pallas import tpu as pltpu


def _actor_head_kernel(x_ref, w1_ref, b1_ref, w2_ref, b2_ref, o_ref):
    # x_ref:  (tm, E)   w1_ref: (E, E)   b1_ref: (1, E)
    # w2_ref: (1, E)    b2_ref: (1, 1) in SMEM    o_ref: (tm, 1)
    # First layer on the MXU with f32 accumulation (inputs may be f32 or bf16).
    h = jnp.dot(x_ref[...], w1_ref[...], preferred_element_type=jnp.float32)
    # Bias + ReLU on the VPU in f32.
    h = jnp.maximum(h + b1_ref[...], 0.0)
    # E -> 1 projection as VPU multiply + XLU lane-reduction (keeps the MXU dedicated to the
    # big matmul and avoids a sublane-sparse (E,1) weight tile).
    logits = jnp.sum(h * w2_ref[...], axis=-1, keepdims=True) + b2_ref[0, 0]
    o_ref[...] = logits.astype(o_ref.dtype)


@functools.partial(jax.jit, static_argnames=("tm", "use_bf16"))
def actor_forward(state_embeddings, w1, b1, w2, b2, *, tm=1024, use_bf16=False):
    """Pallas implementation of Actor.forward.

    state_embeddings: (..., E) float32
    w1: (E, E) [pre-transposed: x @ w1 == x @ W1.T of nn.Linear]
    b1: (E,)   w2: (E, 1)   b2: (1,)
    returns logits with shape state_embeddings.shape[:-1]
    """
    E = state_embeddings.shape[-1]
    lead_shape = state_embeddings.shape[:-1]
    x = state_embeddings.reshape(-1, E)
    M = x.shape[0]

    # Shrink the row tile for tiny inputs (a block equal to the full array dim is always legal);
    # for large inputs tm stays a multiple of 8 (and of 16, fine for bf16 packing).
    tm_eff = M if M < tm else tm

    if use_bf16:
        # bf16 operands for the MXU (v6e/v7x recommendation); accumulation stays f32 in-kernel.
        x = x.astype(jnp.bfloat16)
        w1 = w1.astype(jnp.bfloat16)

    b1_2d = b1.reshape(1, E).astype(jnp.float32)
    w2_row = w2.reshape(1, E).astype(jnp.float32)   # (E,1) -> (1,E) lane row for VPU broadcast
    b2_sc = b2.reshape(1, 1).astype(jnp.float32)    # scalar, lives in SMEM

    grid = (pl.cdiv(M, tm_eff),)

    out = pl.pallas_call(
        _actor_head_kernel,
        out_shape=jax.ShapeDtypeStruct((M, 1), jnp.float32),
        grid_spec=pltpu.PrefetchScalarGridSpec(
            num_scalar_prefetch=0,
            grid=grid,
            in_specs=[
                pl.BlockSpec((tm_eff, E), lambda i: (i, 0)),            # x row tile (pipelined)
                pl.BlockSpec((E, E), lambda i: (0, 0)),                 # W1 (resident)
                pl.BlockSpec((1, E), lambda i: (0, 0)),                 # b1 row
                pl.BlockSpec((1, E), lambda i: (0, 0)),                 # w2 row
                pl.BlockSpec(memory_space=pltpu.MemorySpace.SMEM),      # b2 scalar in SMEM
            ],
            out_specs=pl.BlockSpec((tm_eff, 1), lambda i: (i, 0)),
        ),
        compiler_params=pltpu.CompilerParams(
            # Row tiles are independent -> megacore-shard them (v7x: two TensorCores).
            dimension_semantics=("parallel",),
        ),
    )(x, w1, b1_2d, w2_row, b2_sc)

    return out[:, 0].reshape(lead_shape)  # squeeze(-1)


def init_actor_params(key, embedding_dim=128):
    """Deterministic init mimicking nn.Linear (uniform(-1/sqrt(fan_in), 1/sqrt(fan_in)))."""
    k1, k2, k3, k4 = jax.random.split(key, 4)
    bound1 = 1.0 / jnp.sqrt(embedding_dim)
    # Stored pre-transposed so the kernel does x @ w1 (== x @ W.T in PyTorch).
    w1 = jax.random.uniform(k1, (embedding_dim, embedding_dim), jnp.float32, -bound1, bound1)
    b1 = jax.random.uniform(k2, (embedding_dim,), jnp.float32, -bound1, bound1)
    w2 = jax.random.uniform(k3, (embedding_dim, 1), jnp.float32, -bound1, bound1)
    b2 = jax.random.uniform(k4, (1,), jnp.float32, -bound1, bound1)
    return w1, b1, w2, b2


def actor_forward_ref(state_embeddings, w1, b1, w2, b2):
    h = jnp.maximum(state_embeddings @ w1 + b1, 0.0)
    return (h @ w2 + b2)[..., 0]


if __name__ == "__main__":
    embedding_dim = 128

    key = jax.random.PRNGKey(0)
    k_params, k_x1, k_x2 = jax.random.split(key, 3)
    w1, b1, w2, b2 = init_actor_params(k_params, embedding_dim)

    # --- Small case (single tile, tm shrinks to M) ---
    batch, num_nodes = 2, 8
    se_small = jax.random.normal(k_x1, (batch, num_nodes, embedding_dim), jnp.float32)
    logits = jax.block_until_ready(actor_forward(se_small, w1, b1, w2, b2))
    ref = actor_forward_ref(se_small, w1, b1, w2, b2)
    assert logits.shape == (batch, num_nodes), logits.shape
    assert jnp.allclose(logits, ref, atol=1e-4, rtol=1e-4), "small-case mismatch vs reference"

    # --- Larger case: multi-step grid with a partial last block (no wrapper padding) ---
    batch2, num_nodes2 = 3, 700          # M = 2100 -> grid = 3 with tm = 1024
    se_big = jax.random.normal(k_x2, (batch2, num_nodes2, embedding_dim), jnp.float32)
    logits_big = jax.block_until_ready(actor_forward(se_big, w1, b1, w2, b2))
    ref_big = actor_forward_ref(se_big, w1, b1, w2, b2)
    assert logits_big.shape == (batch2, num_nodes2), logits_big.shape
    assert jnp.allclose(logits_big, ref_big, atol=1e-4, rtol=1e-4), "big-case mismatch vs reference"

    # --- bf16 MXU path (v6e/v7x recommendation), looser tolerance ---
    logits_bf16 = jax.block_until_ready(actor_forward(se_small, w1, b1, w2, b2, use_bf16=True))
    assert jnp.allclose(logits_bf16, ref, atol=5e-2, rtol=5e-2), "bf16-case mismatch vs reference"

    print("KERNEL_OK")
</pallas_src>

<mosaic_0001>
module attributes {stable_mosaic.version = 11 : i64} {
  func.func @_actor_head_kernel(%arg0: i32, %arg1: memref<16x128xf32, #tpu.memory_space<vmem>>, %arg2: memref<128x128xf32, #tpu.memory_space<vmem>>, %arg3: memref<1x128xf32, #tpu.memory_space<vmem>>, %arg4: memref<1x128xf32, #tpu.memory_space<vmem>>, %arg5: memref<1x1xf32, #tpu.memory_space<smem>>, %arg6: memref<16x1xf32, #tpu.memory_space<vmem>>) attributes {dimension_semantics = [#tpu.dimension_semantics<parallel>], iteration_bounds = array<i64: 1>, scalar_prefetch = 0 : i64, scratch_operands = 0 : i64, tpu.core_type = #tpu.core_type<tc>, window_params = [{transform_indices = @transform_0, window_bounds = array<i64: 16, 128>}, {pipeline_mode = #tpu.pipeline_mode<synchronous>, transform_indices = @transform_1, window_bounds = array<i64: 128, 128>}, {pipeline_mode = #tpu.pipeline_mode<synchronous>, transform_indices = @transform_2, window_bounds = array<i64: 1, 128>}, {pipeline_mode = #tpu.pipeline_mode<synchronous>, transform_indices = @transform_3, window_bounds = array<i64: 1, 128>}, {transform_indices = @transform_4, window_bounds = array<i64: 1, 1>}, {transform_indices = @transform_5, window_bounds = array<i64: 16, 1>}]} {
    %c0 = arith.constant 0 : index
    %c0_0 = arith.constant 0 : index
    %0 = vector.load %arg1[%c0, %c0_0] : memref<16x128xf32, #tpu.memory_space<vmem>>, vector<16x128xf32>
    %c0_1 = arith.constant 0 : index
    %c0_2 = arith.constant 0 : index
    %1 = vector.load %arg2[%c0_1, %c0_2] : memref<128x128xf32, #tpu.memory_space<vmem>>, vector<128x128xf32>
    %cst = arith.constant dense<0.000000e+00> : vector<16x128xf32>
    %2 = tpu.matmul %0, %1, %cst {dimension_numbers = #tpu.dot_dimension_numbers<[1], [0], [0], [1], [0, 0, 1, 1], [], []>} : vector<16x128xf32>, vector<128x128xf32>, vector<16x128xf32> -> vector<16x128xf32>
    %c0_3 = arith.constant 0 : index
    %c0_4 = arith.constant 0 : index
    %3 = vector.load %arg3[%c0_3, %c0_4] : memref<1x128xf32, #tpu.memory_space<vmem>>, vector<1x128xf32>
    %4 = vector.broadcast %3 : vector<1x128xf32> to vector<16x128xf32>
    %5 = arith.addf %2, %4 : vector<16x128xf32>
    %cst_5 = arith.constant 0.000000e+00 : f32
    %6 = vector.broadcast %cst_5 : f32 to vector<16x128xf32>
    %7 = arith.maximumf %5, %6 : vector<16x128xf32>
    %c0_6 = arith.constant 0 : index
    %c0_7 = arith.constant 0 : index
    %8 = vector.load %arg4[%c0_6, %c0_7] : memref<1x128xf32, #tpu.memory_space<vmem>>, vector<1x128xf32>
    %9 = vector.broadcast %8 : vector<1x128xf32> to vector<16x128xf32>
    %10 = arith.mulf %7, %9 : vector<16x128xf32>
    %cst_8 = arith.constant dense<0.000000e+00> : vector<16xf32>
    %11 = vector.multi_reduction <add>, %10, %cst_8 [1] : vector<16x128xf32> to vector<16xf32>
    %12 = vector.shape_cast %11 : vector<16xf32> to vector<16x1xf32>
    %c0_9 = arith.constant 0 : index
    %c0_10 = arith.constant 0 : index
    %13 = memref.load %arg5[%c0_9, %c0_10] : memref<1x1xf32, #tpu.memory_space<smem>>
    %14 = vector.broadcast %13 : f32 to vector<16x1xf32>
    %15 = arith.addf %12, %14 : vector<16x1xf32>
    %c0_11 = arith.constant 0 : index
    %c0_12 = arith.constant 0 : index
    %16 = vector.load %arg6[%c0_11, %c0_12] : memref<16x1xf32, #tpu.memory_space<vmem>>, vector<16x1xf32>
    tpu.vector_store %arg6[%c0_11, %c0_12], %15 {strides = array<i32>} : memref<16x1xf32, #tpu.memory_space<vmem>>, vector<16x1xf32>,
    return
  }
  func.func @transform_0(%arg0: i32) -> (i32, i32) {
    %c0_i32 = arith.constant 0 : i32
    %c0_i32_0 = arith.constant 0 : i32
    return %arg0, %c0_i32 : i32, i32
  }
  func.func @transform_1(%arg0: i32) -> (i32, i32) {
    %c0_i32 = arith.constant 0 : i32
    %c0_i32_0 = arith.constant 0 : i32
    %c0_i32_1 = arith.constant 0 : i32
    return %c0_i32, %c0_i32_0 : i32, i32
  }
  func.func @transform_2(%arg0: i32) -> (i32, i32) {
    %c0_i32 = arith.constant 0 : i32
    %c0_i32_0 = arith.constant 0 : i32
    %c0_i32_1 = arith.constant 0 : i32
    return %c0_i32, %c0_i32_0 : i32, i32
  }
  func.func @transform_3(%arg0: i32) -> (i32, i32) {
    %c0_i32 = arith.constant 0 : i32
    %c0_i32_0 = arith.constant 0 : i32
    %c0_i32_1 = arith.constant 0 : i32
    return %c0_i32, %c0_i32_0 : i32, i32
  }
  func.func @transform_4(%arg0: i32) -> (i32, i32) {
    %c0_i32 = arith.constant 0 : i32
    %c0_i32_0 = arith.constant 0 : i32
    %c0_i32_1 = arith.constant 0 : i32
    return %c0_i32, %c0_i32_0 : i32, i32
  }
  func.func @transform_5(%arg0: i32) -> (i32, i32) {
    %c0_i32 = arith.constant 0 : i32
    %c0_i32_0 = arith.constant 0 : i32
    return %arg0, %c0_i32 : i32, i32
  }
}

</mosaic_0001>

<bundles_post_ra>
// kernel: squeeze.1
= control target key start
LH: loop header
LB: loop body
LE: loop exit
PB: predicated region body
PF: predicated region fallthrough
CT: control target
= control target key end

     0   :  { %s80_s0 = inlined_call_operand.vmem [shape: f32[16], index: 0, kind: input, shape index: {}]   ;;  %s81_s1 = inlined_call_operand.hbm [shape: f32[2,8], index: 1, kind: output, shape index: {}]  }
   0x1   :  { %v5_v0 = vld [vmem:[%s80_s0] sm:$0x1] }
   0x2   :  { %2 = vsyncpa [#allocation1], 0  ;;  %6 = vst [vmem:[#allocation3] sm:$0x1] %v5_v0  ;;  %vm8_vm0 = vcmask 64512   ;;  %s62_s0 = smov 120  }
   0x3   :  { %s63_s8 = smov [#allocation0]   ;;  %s27_s1 = sshll.u32 %s81_s1, 4  ;;  %s28_s1 = int_to_ptr.hbm [resolvable:$true] %s27_s1 }
   0x4   :  { %s25_s9 = sshll.u32 %s63_s8, 4  ;;  %s26_s9 = int_to_ptr.vmem [resolvable:$true] %s25_s9 }
   0x9   :  { %v10_v1 = vld [vmem:[#allocation3] sm:$0x1]  }
   0xa   :  { %v7_v2 = vld [vmem:[#allocation3] sm:$0x1]   ;;  %11 = vrot.lane.b32.xlu0 %v10_v1, %s62_s0 }
   0xb   :  { %9 = vst.msk [vmem:[#allocation2] sm:$0x1] %vm8_vm0, %v7_v2  }
  0x7c   :  { %v12_v3 = vpop.permute.xlu0 %11  }
  0x7d   :  { %15 = vst.msk [vmem:[#allocation2 + $0x1] sm:$0x1] %vm8_vm0, %v12_v3  }
  0x84   :  { %v18_v4 = vld [vmem:[#allocation2] sm:$0x3] }
  0x85   :  { %21 = vst [vmem:[#allocation0] sm:$0x3] %v18_v4 }
  0x86   :  { %30 = dma.vmem_to_hbm [thread:$0]  %s26_s9, 32, %s28_s1, [#allocation1]  }
  0x87   :  { %60 = dma.done.wait [#allocation1], 32  }
  0x88   :  { %61 = vsyncadd [#allocation1], 4294967264 }
  0x89   :  { %33 = vsyncpa [#allocation1], 1 }

// kernel: actor_forward.1
= control target key start
LH: loop header
LB: loop body
LE: loop exit
PB: predicated region body
PF: predicated region fallthrough
CT: control target
= control target key end

     0   :  { %11 = vsyncpa [#allocation4], 0  ;;  %s252_s0 = inlined_call_operand.hbm [shape: f32[16,128], index: 0, kind: input, shape index: {}]   ;;  %s253_s1 = inlined_call_operand.hbm [shape: f32[128,128], index: 1, kind: input, shape index: {}]   ;;  %s254_s2 = inlined_call_operand.vmem [shape: f32[1,128], index: 2, kind: input, shape index: {}]   ;;  %s255_s3 = inlined_call_operand.vmem [shape: f32[1,128], index: 3, kind: input, shape index: {}]   ;;  %s256_s4 = inlined_call_operand.<no memory space> [shape: f32[1,1], index: 4, kind: input, shape index: {}]   ;;  %s257_s5 = inlined_call_operand.vmem [shape: f32[16,1], index: 5, kind: output, shape index: {}]  }
   0x1   :  { %s17_s20 = sshll.u32 %s252_s0, 4  ;;  %s18_s20 = int_to_ptr.hbm [resolvable:$true] %s17_s20 }
   0x2   :  { %12 = vsyncpa [#allocation6], 0  ;;  %s197_s21 = smov [#allocation3]   ;;  %s30_s25 = sshll.u32 %s253_s1, 4  ;;  %s31_s25 = int_to_ptr.hbm [resolvable:$true] %s30_s25 }
   0x3   :  { %s19_s22 = sshll.u32 %s197_s21, 4  ;;  %s198_s26 = smov 128   ;;  %s20_s22 = int_to_ptr.vmem [resolvable:$true] %s19_s22 }
   0x4   :  { %s199_s27 = smov 8   ;;  %s200_s28 = smov [#allocation5]  }
   0x5   :  { %25 = dma.hbm_to_vmem [thread:$0]  %s18_s20, 256, %s20_s22, [#allocation4], %s198_s26, %s198_s26, %s199_s27  }
   0x6   :  { %s32_s29 = sshll.u32 %s200_s28, 4  ;;  %s33_s29 = int_to_ptr.vmem [resolvable:$true] %s32_s29 }
   0x7   :  { %38 = dma.hbm_to_vmem [thread:$0]  %s31_s25, 2048, %s33_s29, [#allocation6], %s198_s26, %s198_s26, %s199_s27  }
   0x8   :  { %193 = dma.done.wait [#allocation4], 256  }
   0x9   :  { %194 = vsyncadd [#allocation4], 4294967040 }
   0xa   :  { %195 = dma.done.wait [#allocation6], 2048  }
   0xb   :  { %196 = vsyncadd [#allocation6], 4294965248  ;;  %v70_v0 = vld [vmem:[#allocation5 + $0x78] sm:$0xff]  ;;  %v69_v1 = vld [vmem:[#allocation5 + $0x70] sm:$0xff]  ;;  %v111_v28 = vstv %s256_s4  ;;  %vm114_vm0 = vcmask 7168  }
   0xc   :  { %75 = vmatpush.msra.mxu0 %v70_v0  ;;  %123 = vmatpush.msra.mxu1 %v70_v0  ;;  %v68_v2 = vld [vmem:[#allocation5 + $0x68] sm:$0xff]  ;;  %v67_v3 = vld [vmem:[#allocation5 + $0x60] sm:$0xff]  ;;  %v66_v4 = vld [vmem:[#allocation5 + $0x58] sm:$0xff] }
   0xd   :  { %v65_v5 = vld [vmem:[#allocation5 + $0x50] sm:$0xff]  ;;  %v64_v6 = vld [vmem:[#allocation5 + $0x48] sm:$0xff]  ;;  %v63_v7 = vld [vmem:[#allocation5 + $0x40] sm:$0xff] }
   0xe   :  { %76 = vmatpush.msra.mxu0 %v69_v1  ;;  %124 = vmatpush.msra.mxu1 %v69_v1  ;;  %v62_v8 = vld [vmem:[#allocation5 + $0x38] sm:$0xff]  ;;  %v61_v9 = vld [vmem:[#allocation5 + $0x30] sm:$0xff]  ;;  %v60_v10 = vld [vmem:[#allocation5 + $0x28] sm:$0xff] }
   0xf   :  { %v59_v11 = vld [vmem:[#allocation5 + $0x20] sm:$0xff]  ;;  %v58_v12 = vld [vmem:[#allocation5 + $0x18] sm:$0xff]  ;;  %v57_v13 = vld [vmem:[#allocation5 + $0x10] sm:$0xff] }
  0x10   :  { %77 = vmatpush.msra.mxu0 %v68_v2  ;;  %125 = vmatpush.msra.mxu1 %v68_v2  ;;  %v56_v14 = vld [vmem:[#allocation5 + $0x8] sm:$0xff]  ;;  %v55_v15 = vld [vmem:[#allocation5] sm:$0xff]  ;;  %v53_v16 = vld [vmem:[#allocation3] sm:$0xff] }
  0x11   :  { %v54_v17 = vld [vmem:[#allocation3 + $0x8] sm:$0xff]  ;;  %v143_v18 = vld [vmem:[%s254_s2] ss:$0 sm:$0xff] }
  0x12   :  { %78 = vmatpush.msra.mxu0 %v67_v3  ;;  %126 = vmatpush.msra.mxu1 %v67_v3  ;;  %v144_v22 = vld [vmem:[%s255_s3] ss:$0 sm:$0xff] }
  0x14   :  { %79 = vmatpush.msra.mxu0 %v66_v4  ;;  %127 = vmatpush.msra.mxu1 %v66_v4 }
  0x16   :  { %80 = vmatpush.msra.mxu0 %v65_v5  ;;  %128 = vmatpush.msra.mxu1 %v65_v5 }
  0x18   :  { %81 = vmatpush.msra.mxu0 %v64_v6  ;;  %129 = vmatpush.msra.mxu1 %v64_v6 }
  0x1a   :  { %82 = vmatpush.msra.mxu0 %v63_v7  ;;  %130 = vmatpush.msra.mxu1 %v63_v7 }
  0x1c   :  { %83 = vmatpush.msra.mxu0 %v62_v8  ;;  %131 = vmatpush.msra.mxu1 %v62_v8 }
  0x1e   :  { %84 = vmatpush.msra.mxu0 %v61_v9  ;;  %132 = vmatpush.msra.mxu1 %v61_v9 }
  0x20   :  { %85 = vmatpush.msra.mxu0 %v60_v10  ;;  %133 = vmatpush.msra.mxu1 %v60_v10 }
  0x22   :  { %86 = vmatpush.msra.mxu0 %v59_v11  ;;  %134 = vmatpush.msra.mxu1 %v59_v11 }
  0x24   :  { %87 = vmatpush.msra.mxu0 %v58_v12  ;;  %135 = vmatpush.msra.mxu1 %v58_v12 }
  0x26   :  { %88 = vmatpush.msra.mxu0 %v57_v13  ;;  %136 = vmatpush.msra.mxu1 %v57_v13 }
  0x28   :  { %89 = vmatpush.msra.mxu0 %v56_v14  ;;  %137 = vmatpush.msra.mxu1 %v56_v14 }
  0x2a   :  { %90 = vmatpush.msra.mxu0 %v55_v15  ;;  %138 = vmatpush.msra.mxu1 %v55_v15 }
  0x2b   :  { %91 = vmatmul.f32.vlgmr.msra.gmra.mxu0 %v53_v16  ;;  %94 = vmatmul.f32.vlgmr.msra.gmra.mxu1 %v54_v17 }
  0xa8   :  { %v92_v19 = vpop.f32.mrf.mxu0  ;;  %v95_v20 = vpop.f32.mrf.mxu1 }
  0xa9   :  { %v93_v21 = vadd.f32 %v143_v18, %v92_v19  ;;  %v96_v24 = vadd.f32 %v143_v18, %v95_v20 }
  0xab   :  { %v98_v23 = vmax.f32 %v93_v21, 0.0  ;;  %v99_v26 = vmax.f32 %v96_v24, 0.0 }
  0xad   :  { %v104_v25 = vmul.f32 %v144_v22, %v98_v23  ;;  %v105_v27 = vmul.f32 %v144_v22, %v99_v26 }
  0xaf   :  { %106 = vadd.xlane.f32.xlu0 %v104_v25 }
  0xb7   :  { %108 = vadd.xlane.f32.xlu0 %v105_v27 }
 0x122   :  { %v107_v29 = vpop.xlane.xlu0 %106 }
 0x123   :  { %v112_v30 = vadd.f32 %v111_v28, %v107_v29 }
 0x125   :  { %115 = vst.msk [vmem:[%s257_s5] sm:$0xff] %vm114_vm0, %v112_v30 }
 0x12a   :  { %v109_v31 = vpop.xlane.xlu0 %108 }
 0x12b   :  { %v113_v32 = vadd.f32 %v111_v28, %v109_v31 }
 0x12d   :  { %116 = vst.msk [vmem:[%s257_s5 + $0x8] sm:$0xff] %vm114_vm0, %v113_v32 }
 0x12e   :  { %121 = vsyncpa [#allocation4], 1 }
 0x12f   :  { %122 = vsyncpa [#allocation6], 1 }

</bundles_post_ra>
